<compile_context>
chip_gen: v7x
topology: tpu7x:2x2x1
jax: 0.10.0
libtpu: 0.0.40
codegen_flags: <defaults>
</compile_context>

<pallas_src>
import jax
import jax.numpy as jnp
from jax.experimental import pallas as pl
from jax.experimental.pallas import tpu as pltpu


def _prelu(x, alpha):
    # 3-op PReLU (cmp / mul / select), done in f32.
    return jnp.where(x >= 0.0, x, alpha * x)


def _spatial_factors_kernel(alpha_ref, z_ref, w0_ref, b0_ref, w1_ref, b1_ref,
                            w2_ref, b2_ref, out_ref):
    alpha = alpha_ref[0]          # scalar in SMEM
    cdt = w0_ref.dtype            # MXU input dtype (bf16 by default, or f32)

    # Layer 0: Linear (MXU, f32 accumulate) + PReLU in f32.
    h0 = jnp.dot(z_ref[...], w0_ref[...],
                 preferred_element_type=jnp.float32) + b0_ref[...]
    h0 = _prelu(h0, alpha)

    # Layer 1: Linear + PReLU.
    h1 = jnp.dot(h0.astype(cdt), w1_ref[...],
                 preferred_element_type=jnp.float32) + b1_ref[...]
    h1 = _prelu(h1, alpha)

    # Output layer: one fused wide-N matmul, lane-dense store of loc||scale.
    out = jnp.dot(h1.astype(cdt), w2_ref[...],
                  preferred_element_type=jnp.float32) + b2_ref[...]
    out_ref[...] = out.astype(out_ref.dtype)


def _round_up(x, m):
    return (x + m - 1) // m * m


def spatial_factors_forward(z_F, params, D, factor_dim, *, batch_tile=256,
                            compute_dtype=jnp.bfloat16):
    """Runs the fused MLP in one Pallas kernel; returns (loc, scale)."""
    w0, b0, w1, b1, w2, b2, alpha = params
    B, zF_dim = z_F.shape
    h0_dim = w0.shape[1]
    h1_dim = w1.shape[1]
    out_dim = w2.shape[1]
    split = D * factor_dim
    assert out_dim == 2 * split

    # MXU inputs in compute_dtype (bf16 halves weight DMA/VMEM + activation
    # bytes); biases, accumulation and PReLU stay f32.
    w0c = w0.astype(compute_dtype)
    w1c = w1.astype(compute_dtype)
    w2c = w2.astype(compute_dtype)
    z_c = z_F.astype(compute_dtype)
    b0f = b0.astype(jnp.float32)
    b1f = b1.astype(jnp.float32)
    b2f = b2.astype(jnp.float32)
    alpha_f = alpha.astype(jnp.float32)

    # Batch tiling: sublane-aligned, large enough to fill the MXU, but capped
    # so the grid has >= 2 steps whenever the batch allows (shards across
    # v7x's two TensorCores and overlaps DMA with compute everywhere).
    B8 = _round_up(B, 8)
    TB = min(batch_tile, B8)
    if B8 >= 16:
        TB = min(TB, _round_up(pl.cdiv(B8, 2), 8))
    B_pad = _round_up(B, TB)
    if B_pad != B:
        z_c = jnp.pad(z_c, ((0, B_pad - B), (0, 0)))
    grid = (B_pad // TB,)

    # Weights/biases: same block every grid step -> resident in VMEM; single
    # buffered (no point double-buffering a constant block).
    def resident(shape):
        return pl.BlockSpec(shape, lambda i: (0, 0),
                            pipeline_mode=pl.Buffered(1))

    itemsize = jnp.dtype(compute_dtype).itemsize
    weight_bytes = (zF_dim * h0_dim + h0_dim * h1_dim + h1_dim * out_dim) * itemsize
    bias_bytes = (h0_dim + h1_dim + out_dim) * 4
    stream_bytes = 2 * TB * zF_dim * itemsize + 2 * TB * out_dim * 4  # double-buffered
    interm_bytes = TB * (h0_dim + h1_dim + out_dim) * 4               # f32 h0/h1/out
    vmem_budget = weight_bytes + bias_bytes + stream_bytes + interm_bytes
    vmem_limit = max(8 << 20, min(int(1.5 * vmem_budget) + (2 << 20), 64 << 20))

    flops = 2 * B_pad * (zF_dim * h0_dim + h0_dim * h1_dim + h1_dim * out_dim)
    bytes_accessed = (B_pad * zF_dim * itemsize + B_pad * out_dim * 4
                      + weight_bytes + bias_bytes + 4)

    out = pl.pallas_call(
        _spatial_factors_kernel,
        out_shape=jax.ShapeDtypeStruct((B_pad, out_dim), jnp.float32),
        grid=grid,
        in_specs=[
            pl.BlockSpec(memory_space=pltpu.MemorySpace.SMEM),    # alpha (scalar)
            pl.BlockSpec((TB, zF_dim), lambda i: (i, 0)),         # z_F batch tile
            resident((zF_dim, h0_dim)), resident((1, h0_dim)),    # W0, b0
            resident((h0_dim, h1_dim)), resident((1, h1_dim)),    # W1, b1
            resident((h1_dim, out_dim)), resident((1, out_dim)),  # W2, b2 (fused)
        ],
        out_specs=pl.BlockSpec((TB, out_dim), lambda i: (i, 0)),  # lane-dense
        compiler_params=pltpu.CompilerParams(
            dimension_semantics=("parallel",),
            vmem_limit_bytes=vmem_limit),
        cost_estimate=pl.CostEstimate(flops=flops, transcendentals=0,
                                      bytes_accessed=bytes_accessed),
    )(alpha_f, z_c, w0c, b0f, w1c, b1f, w2c, b2f)

    # Wrapper-side split of loc/scale (avoids masked partial stores in-kernel).
    loc = out[:B, :split]
    scale = out[:B, split:]
    return loc, scale


def init_params(key, zF_dim, D, factor_dim):
    """Deterministic synthetic parameter init (PyTorch shapes, transposed)."""
    h0_dim = 2 * zF_dim
    h1_dim = 4 * zF_dim
    out_dim = 2 * D * factor_dim
    k0, k1, k2, k3, k4, k5 = jax.random.split(key, 6)

    # Stored as [in, out] so the kernel does x @ W + b.
    w0 = jax.random.normal(k0, (zF_dim, h0_dim), jnp.float32) * (1.0 / zF_dim ** 0.5)
    b0 = jax.random.normal(k1, (1, h0_dim), jnp.float32) * 0.01
    w1 = jax.random.normal(k2, (h0_dim, h1_dim), jnp.float32) * (1.0 / h0_dim ** 0.5)
    b1 = jax.random.normal(k3, (1, h1_dim), jnp.float32) * 0.01
    w2 = jax.random.normal(k4, (h1_dim, out_dim), jnp.float32) * (1.0 / h1_dim ** 0.5)
    b2 = jax.random.normal(k5, (1, out_dim), jnp.float32) * 0.01
    alpha = jnp.full((1,), 0.25, jnp.float32)  # nn.PReLU() default init
    return (w0, b0, w1, b1, w2, b2, alpha)


def _reference(z_F, params):
    """Exact f32 reference (matches the PyTorch forward)."""
    w0, b0, w1, b1, w2, b2, alpha = params
    a = alpha[0]
    prelu = lambda x: jnp.where(x >= 0.0, x, a * x)
    h0 = prelu(z_F @ w0 + b0)
    h1 = prelu(h0 @ w1 + b1)
    return h1 @ w2 + b2


def _reference_bf16(z_F, params):
    """Reference that mimics the kernel's bf16-input / f32-accumulate math."""
    w0, b0, w1, b1, w2, b2, alpha = params
    a = alpha[0].astype(jnp.float32)
    bf = jnp.bfloat16
    prelu = lambda x: jnp.where(x >= 0.0, x, a * x)
    dot = lambda x, w: jnp.dot(x.astype(bf), w.astype(bf),
                               preferred_element_type=jnp.float32)
    h0 = prelu(dot(z_F, w0) + b0.astype(jnp.float32))
    h1 = prelu(dot(h0, w1) + b1.astype(jnp.float32))
    return dot(h1, w2) + b2.astype(jnp.float32)


if __name__ == "__main__":
    # Small shapes consistent with the module's forward.
    B, zF_dim, D, factor_dim = 8, 32, 16, 4   # out = [B, 2*D*factor_dim] = [8, 128]
    split = D * factor_dim

    key = jax.random.PRNGKey(0)
    kz, kp = jax.random.split(key)
    z_F = jax.random.normal(kz, (B, zF_dim), jnp.float32)
    params = init_params(kp, zF_dim, D, factor_dim)

    # 1) f32 path: exact check against the pure-JAX reference.
    loc32, scale32 = spatial_factors_forward(z_F, params, D, factor_dim,
                                             compute_dtype=jnp.float32)
    loc32 = jax.block_until_ready(loc32)
    scale32 = jax.block_until_ready(scale32)
    ref = _reference(z_F, params)
    assert loc32.shape == (B, split) and scale32.shape == (B, split)
    assert jnp.allclose(loc32, ref[:, :split], atol=1e-4, rtol=1e-4)
    assert jnp.allclose(scale32, ref[:, split:], atol=1e-4, rtol=1e-4)

    # 2) Default bf16 path: check against a matching bf16/f32-acc reference,
    #    plus a loose sanity check against the exact f32 reference.
    loc, scale = spatial_factors_forward(z_F, params, D, factor_dim)
    loc = jax.block_until_ready(loc)
    scale = jax.block_until_ready(scale)
    ref_bf = _reference_bf16(z_F, params)
    assert loc.shape == (B, split) and scale.shape == (B, split)
    assert jnp.allclose(loc, ref_bf[:, :split], atol=2e-3, rtol=2e-3)
    assert jnp.allclose(scale, ref_bf[:, split:], atol=2e-3, rtol=2e-3)
    assert jnp.allclose(loc, ref[:, :split], atol=1e-1, rtol=1e-1)
    assert jnp.allclose(scale, ref[:, split:], atol=1e-1, rtol=1e-1)

    # 3) Batch-padding + multi-step-grid path (B not a multiple of the tile;
    #    grid has 2 steps here, exercising the "parallel" batch axis).
    B2 = 12
    z_F2 = jax.random.normal(jax.random.PRNGKey(1), (B2, zF_dim), jnp.float32)
    loc2, scale2 = spatial_factors_forward(z_F2, params, D, factor_dim,
                                           compute_dtype=jnp.float32)
    loc2 = jax.block_until_ready(loc2)
    scale2 = jax.block_until_ready(scale2)
    ref2 = _reference(z_F2, params)
    assert loc2.shape == (B2, split) and scale2.shape == (B2, split)
    assert jnp.allclose(loc2, ref2[:, :split], atol=1e-4, rtol=1e-4)
    assert jnp.allclose(scale2, ref2[:, split:], atol=1e-4, rtol=1e-4)

    print("KERNEL_OK")
</pallas_src>

<mosaic_0001>
module attributes {stable_mosaic.version = 11 : i64} {
  func.func @_spatial_factors_kernel(%arg0: i32, %arg1: memref<1xf32, #tpu.memory_space<smem>>, %arg2: memref<8x32xf32, #tpu.memory_space<vmem>>, %arg3: memref<32x64xf32, #tpu.memory_space<vmem>>, %arg4: memref<1x64xf32, #tpu.memory_space<vmem>>, %arg5: memref<64x128xf32, #tpu.memory_space<vmem>>, %arg6: memref<1x128xf32, #tpu.memory_space<vmem>>, %arg7: memref<128x128xf32, #tpu.memory_space<vmem>>, %arg8: memref<1x128xf32, #tpu.memory_space<vmem>>, %arg9: memref<8x128xf32, #tpu.memory_space<vmem>>) attributes {dimension_semantics = [#tpu.dimension_semantics<parallel>], iteration_bounds = array<i64: 1>, scalar_prefetch = 0 : i64, scratch_operands = 0 : i64, tpu.core_type = #tpu.core_type<tc>, window_params = [{transform_indices = @transform_0, window_bounds = array<i64: 1>}, {transform_indices = @transform_1, window_bounds = array<i64: 8, 32>}, {pipeline_mode = #tpu.pipeline_mode<synchronous>, transform_indices = @transform_2, window_bounds = array<i64: 32, 64>}, {pipeline_mode = #tpu.pipeline_mode<synchronous>, transform_indices = @transform_3, window_bounds = array<i64: 1, 64>}, {pipeline_mode = #tpu.pipeline_mode<synchronous>, transform_indices = @transform_4, window_bounds = array<i64: 64, 128>}, {pipeline_mode = #tpu.pipeline_mode<synchronous>, transform_indices = @transform_5, window_bounds = array<i64: 1, 128>}, {pipeline_mode = #tpu.pipeline_mode<synchronous>, transform_indices = @transform_6, window_bounds = array<i64: 128, 128>}, {pipeline_mode = #tpu.pipeline_mode<synchronous>, transform_indices = @transform_7, window_bounds = array<i64: 1, 128>}, {transform_indices = @transform_8, window_bounds = array<i64: 8, 128>}]} {
    %c0 = arith.constant 0 : index
    %0 = memref.load %arg1[%c0] : memref<1xf32, #tpu.memory_space<smem>>
    %c0_0 = arith.constant 0 : index
    %c0_1 = arith.constant 0 : index
    %1 = vector.load %arg2[%c0_0, %c0_1] : memref<8x32xf32, #tpu.memory_space<vmem>>, vector<8x32xf32>
    %c0_2 = arith.constant 0 : index
    %c0_3 = arith.constant 0 : index
    %2 = vector.load %arg3[%c0_2, %c0_3] : memref<32x64xf32, #tpu.memory_space<vmem>>, vector<32x64xf32>
    %cst = arith.constant dense<0.000000e+00> : vector<8x64xf32>
    %3 = tpu.matmul %1, %2, %cst {dimension_numbers = #tpu.dot_dimension_numbers<[1], [0], [0], [1], [0, 0, 1, 1], [], []>} : vector<8x32xf32>, vector<32x64xf32>, vector<8x64xf32> -> vector<8x64xf32>
    %c0_4 = arith.constant 0 : index
    %c0_5 = arith.constant 0 : index
    %4 = vector.load %arg4[%c0_4, %c0_5] : memref<1x64xf32, #tpu.memory_space<vmem>>, vector<1x64xf32>
    %5 = vector.broadcast %4 : vector<1x64xf32> to vector<8x64xf32>
    %6 = arith.addf %3, %5 : vector<8x64xf32>
    %cst_6 = arith.constant 0.000000e+00 : f32
    %7 = vector.broadcast %cst_6 : f32 to vector<8x64xf32>
    %8 = arith.cmpf oge, %6, %7 : vector<8x64xf32>
    %9 = vector.broadcast %0 : f32 to vector<8x64xf32>
    %10 = arith.mulf %9, %6 : vector<8x64xf32>
    %11 = arith.select %8, %6, %10 : vector<8x64xi1>, vector<8x64xf32>
    %c0_7 = arith.constant 0 : index
    %c0_8 = arith.constant 0 : index
    %12 = vector.load %arg5[%c0_7, %c0_8] : memref<64x128xf32, #tpu.memory_space<vmem>>, vector<64x128xf32>
    %cst_9 = arith.constant dense<0.000000e+00> : vector<8x128xf32>
    %13 = tpu.matmul %11, %12, %cst_9 {dimension_numbers = #tpu.dot_dimension_numbers<[1], [0], [0], [1], [0, 0, 1, 1], [], []>} : vector<8x64xf32>, vector<64x128xf32>, vector<8x128xf32> -> vector<8x128xf32>
    %c0_10 = arith.constant 0 : index
    %c0_11 = arith.constant 0 : index
    %14 = vector.load %arg6[%c0_10, %c0_11] : memref<1x128xf32, #tpu.memory_space<vmem>>, vector<1x128xf32>
    %15 = vector.broadcast %14 : vector<1x128xf32> to vector<8x128xf32>
    %16 = arith.addf %13, %15 : vector<8x128xf32>
    %cst_12 = arith.constant 0.000000e+00 : f32
    %17 = vector.broadcast %cst_12 : f32 to vector<8x128xf32>
    %18 = arith.cmpf oge, %16, %17 : vector<8x128xf32>
    %19 = vector.broadcast %0 : f32 to vector<8x128xf32>
    %20 = arith.mulf %19, %16 : vector<8x128xf32>
    %21 = arith.select %18, %16, %20 : vector<8x128xi1>, vector<8x128xf32>
    %c0_13 = arith.constant 0 : index
    %c0_14 = arith.constant 0 : index
    %22 = vector.load %arg7[%c0_13, %c0_14] : memref<128x128xf32, #tpu.memory_space<vmem>>, vector<128x128xf32>
    %cst_15 = arith.constant dense<0.000000e+00> : vector<8x128xf32>
    %23 = tpu.matmul %21, %22, %cst_15 {dimension_numbers = #tpu.dot_dimension_numbers<[1], [0], [0], [1], [0, 0, 1, 1], [], []>} : vector<8x128xf32>, vector<128x128xf32>, vector<8x128xf32> -> vector<8x128xf32>
    %c0_16 = arith.constant 0 : index
    %c0_17 = arith.constant 0 : index
    %24 = vector.load %arg8[%c0_16, %c0_17] : memref<1x128xf32, #tpu.memory_space<vmem>>, vector<1x128xf32>
    %25 = vector.broadcast %24 : vector<1x128xf32> to vector<8x128xf32>
    %26 = arith.addf %23, %25 : vector<8x128xf32>
    %c0_18 = arith.constant 0 : index
    %c0_19 = arith.constant 0 : index
    %27 = vector.load %arg9[%c0_18, %c0_19] : memref<8x128xf32, #tpu.memory_space<vmem>>, vector<8x128xf32>
    tpu.vector_store %arg9[%c0_18, %c0_19], %26 {strides = array<i32>} : memref<8x128xf32, #tpu.memory_space<vmem>>, vector<8x128xf32>,
    return
  }
  func.func @transform_0(%arg0: i32) -> i32 {
    %c0_i32 = arith.constant 0 : i32
    %c0_i32_0 = arith.constant 0 : i32
    return %c0_i32 : i32
  }
  func.func @transform_1(%arg0: i32) -> (i32, i32) {
    %c0_i32 = arith.constant 0 : i32
    %c0_i32_0 = arith.constant 0 : i32
    return %arg0, %c0_i32 : i32, i32
  }
  func.func @transform_2(%arg0: i32) -> (i32, i32) {
    %c0_i32 = arith.constant 0 : i32
    %c0_i32_0 = arith.constant 0 : i32
    %c0_i32_1 = arith.constant 0 : i32
    return %c0_i32, %c0_i32_0 : i32, i32
  }
  func.func @transform_3(%arg0: i32) -> (i32, i32) {
    %c0_i32 = arith.constant 0 : i32
    %c0_i32_0 = arith.constant 0 : i32
    %c0_i32_1 = arith.constant 0 : i32
    return %c0_i32, %c0_i32_0 : i32, i32
  }
  func.func @transform_4(%arg0: i32) -> (i32, i32) {
    %c0_i32 = arith.constant 0 : i32
    %c0_i32_0 = arith.constant 0 : i32
    %c0_i32_1 = arith.constant 0 : i32
    return %c0_i32, %c0_i32_0 : i32, i32
  }
  func.func @transform_5(%arg0: i32) -> (i32, i32) {
    %c0_i32 = arith.constant 0 : i32
    %c0_i32_0 = arith.constant 0 : i32
    %c0_i32_1 = arith.constant 0 : i32
    return %c0_i32, %c0_i32_0 : i32, i32
  }
  func.func @transform_6(%arg0: i32) -> (i32, i32) {
    %c0_i32 = arith.constant 0 : i32
    %c0_i32_0 = arith.constant 0 : i32
    %c0_i32_1 = arith.constant 0 : i32
    return %c0_i32, %c0_i32_0 : i32, i32
  }
  func.func @transform_7(%arg0: i32) -> (i32, i32) {
    %c0_i32 = arith.constant 0 : i32
    %c0_i32_0 = arith.constant 0 : i32
    %c0_i32_1 = arith.constant 0 : i32
    return %c0_i32, %c0_i32_0 : i32, i32
  }
  func.func @transform_8(%arg0: i32) -> (i32, i32) {
    %c0_i32 = arith.constant 0 : i32
    %c0_i32_0 = arith.constant 0 : i32
    return %arg0, %c0_i32 : i32, i32
  }
}

</mosaic_0001>

<bundles_post_ra>
// kernel: tpu_custom_call.1
= control target key start
LH: loop header
LB: loop body
LE: loop exit
PB: predicated region body
PF: predicated region fallthrough
CT: control target
= control target key end

     0   :  { %14 = vsyncpa [#allocation4], 0  ;;  %s802_s0 = inlined_call_operand.<no memory space> [shape: f32[1], index: 0, kind: input, shape index: {}]   ;;  %s803_s1 = inlined_call_operand.hbm [shape: f32[8,32], index: 1, kind: input, shape index: {}]   ;;  %s804_s2 = inlined_call_operand.hbm [shape: f32[32,64], index: 2, kind: input, shape index: {}]   ;;  %s805_s3 = inlined_call_operand.vmem [shape: f32[1,64], index: 3, kind: input, shape index: {}]   ;;  %s806_s4 = inlined_call_operand.hbm [shape: f32[64,128], index: 4, kind: input, shape index: {}]   ;;  %s807_s5 = inlined_call_operand.vmem [shape: f32[1,128], index: 5, kind: input, shape index: {}]   ;;  %s808_s6 = inlined_call_operand.hbm [shape: f32[128,128], index: 6, kind: input, shape index: {}]   ;;  %s809_s7 = inlined_call_operand.vmem [shape: f32[1,128], index: 7, kind: input, shape index: {}]   ;;  %s810_s8 = inlined_call_operand.hbm [shape: f32[8,128], index: 8, kind: output, shape index: {}]  }
   0x1   :  { %15 = vsyncpa [#allocation7], 0 }
   0x2   :  { %16 = vsyncpa [#allocation10], 0 }
   0x3   :  { %17 = vsyncpa [#allocation5], 0  ;;  %s649_s27 = smov [#allocation6]   ;;  %s531_s9 = scalar_lea.hbm %s804_s2, 512 }
   0x4   :  { %s35_s28 = sshll.u32 %s649_s27, 4  ;;  %p532_p0 = scmp.ne.s32.totalorder %s804_s2, %s531_s9  ;;  %s36_s28 = int_to_ptr.vmem [resolvable:$true] %s35_s28 }
   0x5   :  { %p535_p1 = scmp.lt.u32.totalorder %s531_s9, %s804_s2 }
   0x7   :  { %p537_p2 = pnand %p535_p1, %p532_p0 }
   0x9   :  { %540 = shalt.err (!%p537_p2)
}
   0xa   :  { %s541_s14 = scalar_lea.vmem %s36_s28, 512  ;;  %p546_p4 = scmp.lt.s32.totalorder %s36_s28, %s36_s28 }
   0xb   :  { %p542_p3 = scmp.ne.s32.totalorder %s36_s28, %s541_s14  ;;  %p547_p5 = scmp.lt.s32.totalorder %s541_s14, %s541_s14 }
   0xd   :  { %p548_p6 = por %p547_p5, %p546_p4 }
   0xf   :  { %p549_p7 = pnand %p548_p6, %p542_p3 }
  0x11   :  { %552 = shalt.err (!%p549_p7)
}
  0x12   :  { %s650_s15 = smov 128   ;;  %s651_s16 = smov 8  }
  0x13   :  { %41 = dma.hbm_to_vmem [thread:$0]  %s804_s2, 512, %s36_s28, [#allocation7], %s650_s15, %s650_s15, %s651_s16  }
  0x14   :  { %s652_s19 = smov [#allocation3]   ;;  %s653_s21 = smov [#allocation8]  }
  0x15   :  { %s26_s20 = sshll.u32 %s652_s19, 4  ;;  %s49_s22 = sshll.u32 %s653_s21, 4  ;;  %s27_s20 = int_to_ptr.vmem [resolvable:$true] %s26_s20  ;;  %s50_s22 = int_to_ptr.vmem [resolvable:$true] %s49_s22 }
  0x16   :  { %s553_s25 = scalar_lea.hbm %s803_s1, 128 }
  0x17   :  { %p554_p8 = scmp.ne.s32.totalorder %s803_s1, %s553_s25  ;;  %p557_p9 = scmp.lt.u32.totalorder %s553_s25, %s803_s1 }
  0x19   :  { %p559_p10 = pnand %p557_p9, %p554_p8 }
  0x1b   :  { %562 = shalt.err (!%p559_p10)
}
  0x1c   :  { %s563_s2 = scalar_lea.vmem %s27_s20, 128  ;;  %p568_p12 = scmp.lt.s32.totalorder %s27_s20, %s27_s20 }
  0x1d   :  { %p564_p11 = scmp.ne.s32.totalorder %s27_s20, %s563_s2  ;;  %p569_p13 = scmp.lt.s32.totalorder %s563_s2, %s563_s2 }
  0x1f   :  { %p570_p0 = por %p569_p13, %p568_p12 }
  0x21   :  { %p571_p1 = pnand %p570_p0, %p564_p11 }
  0x23   :  { %574 = shalt.err (!%p571_p1)
}
  0x24   :  { %29 = dma.hbm_to_vmem [thread:$0]  %s803_s1, 128, %s27_s20, [#allocation4]  }
  0x25   :  { %s575_s12 = scalar_lea.hbm %s806_s4, 1024 }
  0x26   :  { %p576_p2 = scmp.ne.s32.totalorder %s806_s4, %s575_s12  ;;  %p579_p3 = scmp.lt.u32.totalorder %s575_s12, %s806_s4 }
  0x28   :  { %p581_p4 = pnand %p579_p3, %p576_p2 }
  0x2a   :  { %584 = shalt.err (!%p581_p4)
}
  0x2b   :  { %s585_s19 = scalar_lea.vmem %s50_s22, 1024  ;;  %p590_p6 = scmp.lt.s32.totalorder %s50_s22, %s50_s22 }
  0x2c   :  { %p586_p5 = scmp.ne.s32.totalorder %s50_s22, %s585_s19  ;;  %p591_p7 = scmp.lt.s32.totalorder %s585_s19, %s585_s19 }
  0x2e   :  { %p592_p8 = por %p591_p7, %p590_p6 }
  0x30   :  { %p593_p9 = pnand %p592_p8, %p586_p5 }
  0x32   :  { %596 = shalt.err (!%p593_p9)
}
  0x33   :  { %55 = dma.hbm_to_vmem [thread:$0]  %s806_s4, 1024, %s50_s22, [#allocation7], %s650_s15, %s650_s15, %s651_s16  }
  0x34   :  { %s654_s21 = smov [#allocation9]   ;;  %s597_s26 = scalar_lea.hbm %s808_s6, 2048 }
  0x35   :  { %s63_s23 = sshll.u32 %s654_s21, 4  ;;  %p598_p10 = scmp.ne.s32.totalorder %s808_s6, %s597_s26  ;;  %s64_s23 = int_to_ptr.vmem [resolvable:$true] %s63_s23 }
  0x36   :  { %p601_p11 = scmp.lt.u32.totalorder %s597_s26, %s808_s6 }
  0x38   :  { %p603_p12 = pnand %p601_p11, %p598_p10 }
  0x3a   :  { %606 = shalt.err (!%p603_p12)
}
  0x3b   :  { %s607_s28 = scalar_lea.vmem %s64_s23, 2048  ;;  %p612_p0 = scmp.lt.s32.totalorder %s64_s23, %s64_s23 }
  0x3c   :  { %p608_p13 = scmp.ne.s32.totalorder %s64_s23, %s607_s28  ;;  %p613_p1 = scmp.lt.s32.totalorder %s607_s28, %s607_s28 }
  0x3e   :  { %p614_p2 = por %p613_p1, %p612_p0 }
  0x40   :  { %p615_p3 = pnand %p614_p2, %p608_p13 }
  0x42   :  { %618 = shalt.err (!%p615_p3)
}
  0x43   :  { %69 = dma.hbm_to_vmem [thread:$0]  %s808_s6, 2048, %s64_s23, [#allocation10], %s650_s15, %s650_s15, %s651_s16  }
  0x44   :  { %641 = dma.done.wait [#allocation4], 128  }
  0x45   :  { %642 = vsyncadd [#allocation4], 4294967168 }
  0x46   :  { %643 = dma.done.wait [#allocation7], 1536  }
  0x47   :  { %644 = vsyncadd [#allocation7], 4294965760 }
  0x48   :  { %645 = dma.done.wait [#allocation10], 2048  }
  0x49   :  { %646 = vsyncadd [#allocation10], 4294965248  ;;  %v655_v0 = vmov 0.0|0.0   ;;  %vm656_vm0 = vmmov 0   ;;  %v657_v1 = vmov 0.0   ;;  %v86_v2 = vld [vmem:[#allocation6] sm:$0xff]  ;;  %v172_v44 = vstv %s802_s0 }
  0x4a   :  { %479 = vmatprep.subr.bf16.mxu1 %v655_v0  ;;  %422 = vmatprep.mubr.msk.f32.mxu1 %vm656_vm0, %v657_v1  ;;  %v87_v3 = vld [vmem:[#allocation6 + $0x8] sm:$0xff]  ;;  %v88_v4 = vld [vmem:[#allocation6 + $0x10] sm:$0xff]  ;;  %v89_v6 = vld [vmem:[#allocation6 + $0x18] sm:$0xff]  ;;  %vm97_vm1 = vcmask 261120   ;;  %vm190_vm3 = vcmask 523264   ;;  %s658_s12 = smov [#allocation11]  }
  0x4b   :  { %497 = vmatprep.subr.bf16.mxu0 %v655_v0  ;;  %476 = vmatprep.mubr.msk.f32.mxu0 %vm656_vm0, %v657_v1  ;;  %v480_v5 = vpack.c.bf16 %v87_v3, %v86_v2  ;;  %v483_v7 = vpack.c.bf16 %v89_v6, %v88_v4  ;;  %v175_v8 = vld [vmem:[#allocation8] sm:$0xff]  ;;  %v176_v9 = vld [vmem:[#allocation8 + $0x8] sm:$0xff]  ;;  %v85_v10 = vld [vmem:[#allocation3] sm:$0xff]  ;;  %s367_s13 = sshll.u32 %s658_s12, 4  ;;  %s368_s13 = int_to_ptr.vmem [resolvable:$true] %s367_s13 }
  0x4c   :  { %v486_v11 = vpack.c.bf16 %v176_v9, %v175_v8  ;;  %v177_v12 = vld [vmem:[#allocation8 + $0x10] sm:$0xff]  ;;  %v178_v13 = vld [vmem:[#allocation8 + $0x18] sm:$0xff]  ;;  %v179_v15 = vld [vmem:[#allocation8 + $0x20] sm:$0xff]  ;;  %s619_s14 = scalar_lea.vmem %s368_s13, 128  ;;  %p624_p5 = scmp.lt.s32.totalorder %s368_s13, %s368_s13 }
  0x4d   :  { %481 = vmatpush3.bf16.msra.mxu1 %v480_v5  ;;  %v489_v14 = vpack.c.bf16 %v178_v13, %v177_v12  ;;  %v180_v16 = vld [vmem:[#allocation8 + $0x28] sm:$0xff]  ;;  %v181_v18 = vld [vmem:[#allocation8 + $0x30] sm:$0xff]  ;;  %v182_v19 = vld [vmem:[#allocation8 + $0x38] sm:$0xff]  ;;  %p620_p4 = scmp.ne.s32.totalorder %s368_s13, %s619_s14  ;;  %p625_p6 = scmp.lt.s32.totalorder %s619_s14, %s619_s14 }
  0x4e   :  { %482 = vmatprep.subr.bf16.mxu1 %v655_v0  ;;  %v492_v17 = vpack.c.bf16 %v180_v16, %v179_v15  ;;  %v495_v20 = vpack.c.bf16 %v182_v19, %v181_v18  ;;  %v267_v21 = vld [vmem:[#allocation9] sm:$0xff]  ;;  %v268_v22 = vld [vmem:[#allocation9 + $0x8] sm:$0xff]  ;;  %v269_v23 = vld [vmem:[#allocation9 + $0x10] sm:$0xff] }
  0x4f   :  { %v498_v24 = vpack.c.bf16 %v268_v22, %v267_v21  ;;  %v270_v25 = vld [vmem:[#allocation9 + $0x18] sm:$0xff]  ;;  %v271_v27 = vld [vmem:[#allocation9 + $0x20] sm:$0xff]  ;;  %v272_v28 = vld [vmem:[#allocation9 + $0x28] sm:$0xff]  ;;  %p626_p7 = por %p625_p6, %p624_p5 }
  0x50   :  { %v501_v26 = vpack.c.bf16 %v270_v25, %v269_v23  ;;  %v504_v29 = vpack.c.bf16 %v272_v28, %v271_v27  ;;  %v273_v30 = vld [vmem:[#allocation9 + $0x30] sm:$0xff]  ;;  %v274_v31 = vld [vmem:[#allocation9 + $0x38] sm:$0xff]  ;;  %v275_v33 = vld [vmem:[#allocation9 + $0x40] sm:$0xff] }
  0x51   :  { %484 = vmatpush3.bf16.msra.mxu1 %v483_v7  ;;  %499 = vmatpush3.bf16.msra.mxu0 %v498_v24  ;;  %v507_v32 = vpack.c.bf16 %v274_v31, %v273_v30  ;;  %v276_v34 = vld [vmem:[#allocation9 + $0x48] sm:$0xff]  ;;  %v277_v36 = vld [vmem:[#allocation9 + $0x50] sm:$0xff]  ;;  %v278_v37 = vld [vmem:[#allocation9 + $0x58] sm:$0xff]  ;;  %p627_p8 = pnand %p626_p7, %p620_p4 }
  0x52   :  { %485 = vmatprep.subr.bf16.mxu1 %v655_v0  ;;  %500 = vmatprep.subr.bf16.mxu0 %v655_v0  ;;  %v510_v35 = vpack.c.bf16 %v276_v34, %v275_v33  ;;  %v513_v38 = vpack.c.bf16 %v278_v37, %v277_v36  ;;  %v279_v39 = vld [vmem:[#allocation9 + $0x60] sm:$0xff]  ;;  %v280_v40 = vld [vmem:[#allocation9 + $0x68] sm:$0xff]  ;;  %v378_v42 = vld [vmem:[%s805_s3] ss:$0 sm:$0xff] }
  0x53   :  { %v516_v41 = vpack.c.bf16 %v280_v40, %v279_v39  ;;  %v281_v49 = vld [vmem:[#allocation9 + $0x70] sm:$0xff]  ;;  %v282_v50 = vld [vmem:[#allocation9 + $0x78] sm:$0xff] }
  0x54   :  { %423 = vmatmul.mubr.msk.f32.vlgmr.msra.gmra.mrb[0].mxu1 %vm97_vm1, %v85_v10  ;;  %v519_v51 = vpack.c.bf16 %v282_v50, %v281_v49  ;;  %v380_v52 = vld [vmem:[%s807_s5] ss:$0 sm:$0xff] }
  0x55   :  { %487 = vmatpush3.bf16.msra.mxu1 %v486_v11  ;;  %441 = vmatprep.mubr.msk.f32.mxu1 %vm656_vm0, %v657_v1  ;;  %v382_v58 = vld [vmem:[%s809_s7] ss:$0 sm:$0xff] }
  0x56   :  { %488 = vmatprep.subr.bf16.mxu1 %v655_v0  ;;  %502 = vmatpush3.bf16.msra.mxu0 %v501_v26 }
  0x57   :  { %503 = vmatprep.subr.bf16.mxu0 %v655_v0 }
  0x59   :  { %490 = vmatpush3.bf16.msra.mxu1 %v489_v14 }
  0x5a   :  { %491 = vmatprep.subr.bf16.mxu1 %v655_v0  ;;  %505 = vmatpush3.bf16.msra.mxu0 %v504_v29 }
  0x5b   :  { %506 = vmatprep.subr.bf16.mxu0 %v655_v0 }
  0x5d   :  { %493 = vmatpush3.bf16.msra.mxu1 %v492_v17 }
  0x5e   :  { %494 = vmatprep.subr.bf16.mxu1 %v655_v0  ;;  %508 = vmatpush3.bf16.msra.mxu0 %v507_v32 }
  0x5f   :  { %509 = vmatprep.subr.bf16.mxu0 %v655_v0 }
  0x61   :  { %496 = vmatpush3.bf16.msra.mxu1 %v495_v20 }
  0x62   :  { %511 = vmatpush3.bf16.msra.mxu0 %v510_v35 }
  0x63   :  { %512 = vmatprep.subr.bf16.mxu0 %v655_v0 }
  0x66   :  { %514 = vmatpush3.bf16.msra.mxu0 %v513_v38 }
  0x67   :  { %515 = vmatprep.subr.bf16.mxu0 %v655_v0 }
  0x6a   :  { %517 = vmatpush3.bf16.msra.mxu0 %v516_v41 }
  0x6b   :  { %518 = vmatprep.subr.bf16.mxu0 %v655_v0 }
  0x6e   :  { %520 = vmatpush3.bf16.msra.mxu0 %v519_v51 }
 0x127   :  { %v167_v43 = vpop.f32.mrb[0].mxu1 }
 0x128   :  { %v168_v45 = vadd.f32 %v378_v42, %v167_v43  ;;  %v424_v46 = vpop.f32.mrb[1].mxu1 }
 0x12a   :  { %vm171_vm2 = vcmp.ge.f32.partialorder %v168_v45, 0.0  ;;  %v173_v47 = vmul.f32 %v172_v44, %v168_v45 }
 0x12c   :  { %v174_v48 = vsel %vm171_vm2, %v168_v45, %v173_v47 }
 0x12d   :  { %442 = vmatmul.mubr.msk.f32.vlgmr.msra.gmra.mrb[2].mxu1 %vm190_vm3, %v174_v48 }
 0x200   :  { %v260_v53 = vpop.f32.mrb[2].mxu1 }
 0x201   :  { %v261_v54 = vadd.f32 %v380_v52, %v260_v53  ;;  %v443_v55 = vpop.f32.mrb[3].mxu1 }
 0x203   :  { %v265_v56 = vmul.f32 %v261_v54, %v172_v44  ;;  %vm264_vm4 = vcmp.ge.f32.partialorder %v261_v54, 0.0 }
 0x205   :  { %v266_v57 = vsel %vm264_vm4, %v261_v54, %v265_v56 }
 0x206   :  { %477 = vmatmul.mubr.f32.vlgmr.msra.gmra.mrb[0].mxu0 %v266_v57 }
 0x2d9   :  { %v356_v59 = vpop.f32.mrb[0].mxu0 }
 0x2da   :  { %v357_v60 = vadd.f32 %v382_v58, %v356_v59  ;;  %v478_v61 = vpop.f32.mrb[1].mxu0 }
 0x2dc   :  { %360 = vst [vmem:[#allocation11] sm:$0xff] %v357_v60 }
 0x2dd   :  { %630 = shalt.err (!%p627_p8)
}
 0x2de   :  { %s631_s18 = scalar_lea.hbm %s810_s8, 128 }
 0x2df   :  { %p632_p9 = scmp.ne.s32.totalorder %s810_s8, %s631_s18  ;;  %p635_p10 = scmp.lt.u32.totalorder %s631_s18, %s810_s8 }
 0x2e1   :  { %p637_p11 = pnand %p635_p10, %p632_p9 }
 0x2e3   :  { %640 = shalt.err (!%p637_p11)
}
 0x2e4   :  { %370 = dma.vmem_to_hbm [thread:$0]  %s368_s13, 128, %s810_s8, [#allocation5]  }
 0x2e5   :  { %647 = dma.done.wait [#allocation5], 128  }
 0x2e6   :  { %648 = vsyncadd [#allocation5], 4294967168 }
 0x2e7   :  { %374 = vsyncpa [#allocation4], 1 }
 0x2e8   :  { %375 = vsyncpa [#allocation7], 1 }
 0x2e9   :  { %376 = vsyncpa [#allocation10], 1 }
 0x2ea   :  { %377 = vsyncpa [#allocation5], 1 }

</bundles_post_ra>
